<compile_context>
chip_gen: v7x
topology: tpu7x:2x2x1
jax: 0.10.0
libtpu: 0.0.40
codegen_flags: <defaults>
</compile_context>

<pallas_src>
import functools

import jax
import jax.numpy as jnp
from jax.experimental import pallas as pl
from jax.experimental.pallas import tpu as pltpu

VMEM = pl.BlockSpec(memory_space=pltpu.MemorySpace.VMEM)


# --------------------------------------------------------------------------
# helpers (value-level, used inside kernels)
# --------------------------------------------------------------------------
def _gelu(x):
    # tanh-approx GELU (hits the EUP tanh path, f32 math -> fine on v5e too)
    c = jnp.float32(0.7978845608028654)
    return 0.5 * x * (1.0 + jnp.tanh(c * (x + 0.044715 * x * x * x)))


def _layernorm(h, g, b, eps=1e-5):
    mean = jnp.mean(h, axis=-1, keepdims=True)
    var = jnp.mean(jnp.square(h - mean), axis=-1, keepdims=True)
    return (h - mean) * jax.lax.rsqrt(var + eps) * g + b


# --------------------------------------------------------------------------
# kernel 1: fused input transform + embedding
# --------------------------------------------------------------------------
def embed_kernel(v_ref, t_ref, vw_ref, vb_ref, tw_ref, tb_ref,
                 add_ref, g_ref, b_ref, o_ref, *, T):
    B, L, E = o_ref.shape
    vproj = (jnp.dot(v_ref[...], vw_ref[...],
                     preferred_element_type=jnp.float32)
             + vb_ref[...]).reshape(B, T, E)
    tproj = (jnp.dot(t_ref[...], tw_ref[...],
                     preferred_element_type=jnp.float32)
             + tb_ref[...]).reshape(B, T, E)
    # assemble the (vision, text) stream stacking directly in the output block
    o_ref[:, :T, :] = vproj
    o_ref[:, T:, :] = tproj
    h = o_ref[...] + add_ref[...]             # + token-type emb + position emb
    o_ref[...] = _layernorm(h, g_ref[...], b_ref[...])


# --------------------------------------------------------------------------
# kernel 2: fused transformer stack (all layers), grid = (batch, layer)
# --------------------------------------------------------------------------
def stack_kernel(x_ref, mb_ref, wqkv_ref, bqkv_ref, wo_ref, bo_ref,
                 ln1g_ref, ln1b_ref, w1_ref, b1_ref, w2_ref, b2_ref,
                 ln2g_ref, ln2b_ref, o_ref, *, num_heads):
    l = pl.program_id(1)

    # output block for this batch stays resident in VMEM across the layer axis
    @pl.when(l == 0)
    def _():
        o_ref[...] = x_ref[...]

    x = o_ref[...][0]                          # (L, E) carried activation
    L, E = x.shape
    Dh = E // num_heads
    mb = mb_ref[...][0]                        # (1, L) key-padding bias

    # ---- self-attention: single fused QKV matmul, heads sliced in-register
    qkv = (jnp.dot(x, wqkv_ref[...][0], preferred_element_type=jnp.float32)
           + bqkv_ref[...][0])                 # (L, 3E)
    q = qkv[:, :E] * jnp.float32(1.0 / (Dh ** 0.5))   # scale hoisted onto q
    k = qkv[:, E:2 * E]
    v = qkv[:, 2 * E:]

    wo = wo_ref[...][0]                        # (E, E)
    ao = jnp.zeros((L, E), jnp.float32)
    for h in range(num_heads):
        sl = slice(h * Dh, (h + 1) * Dh)
        s = jnp.dot(q[:, sl], k[:, sl].T,
                    preferred_element_type=jnp.float32) + mb       # (L, L)
        m = jnp.max(s, axis=-1, keepdims=True)
        p = jnp.exp(s - m)
        inv = pl.reciprocal(jnp.sum(p, axis=-1, keepdims=True), approx=True)
        oh = jnp.dot(p, v[:, sl], preferred_element_type=jnp.float32) * inv
        # fold per-head output projection -> no lane-sparse head concat
        ao = ao + jnp.dot(oh, wo[sl, :], preferred_element_type=jnp.float32)
    ao = ao + bo_ref[...][0]

    h1 = _layernorm(x + ao, ln1g_ref[...][0], ln1b_ref[...][0])    # post-LN

    # ---- feed-forward ------------------------------------------------------
    ff = (jnp.dot(h1, w1_ref[...][0], preferred_element_type=jnp.float32)
          + b1_ref[...][0])
    ff = _gelu(ff)
    ff = (jnp.dot(ff, w2_ref[...][0], preferred_element_type=jnp.float32)
          + b2_ref[...][0])
    o_ref[...] = _layernorm(h1 + ff, ln2g_ref[...][0], ln2b_ref[...][0])[None]


# --------------------------------------------------------------------------
# kernel 3: fused output transform (LN + Linear + mask zeroing)
# --------------------------------------------------------------------------
def output_kernel(h_ref, g_ref, b_ref, w_ref, bias_ref, m_ref, o_ref):
    B, L, E = h_ref.shape
    h = _layernorm(h_ref[...], g_ref[...], b_ref[...])
    proj = (jnp.dot(h.reshape(B * L, E), w_ref[...],
                    preferred_element_type=jnp.float32)
            + bias_ref[...]).reshape(B, L, E)
    o_ref[...] = proj * m_ref[...]


# --------------------------------------------------------------------------
# forward (JAX glue around the 3 pallas_calls)
# --------------------------------------------------------------------------
def fusion_encoder_forward(params, input_ids, vision, vision_mask, text, text_mask):
    B, T, Dv = vision.shape
    Dt = text.shape[-1]
    E = params["pos_emb"].shape[1]
    L = 2 * T
    H = params["num_heads"]

    mask = jnp.stack([vision_mask, text_mask], axis=1)       # (B, 2, T), True=valid

    # token-type embedding gather kept in JAX (tiny), fused add happens in-kernel
    tok = params["tok_emb"][input_ids]                        # (B, 2, E)
    addend = (jnp.broadcast_to(tok[:, :, None, :], (B, 2, T, E)).reshape(B, L, E)
              + params["pos_emb"][None, :L, :])

    # --- fused FusionInputTransform + FusionEmbedding -----------------------
    x = pl.pallas_call(
        functools.partial(embed_kernel, T=T),
        out_shape=jax.ShapeDtypeStruct((B, L, E), jnp.float32),
        in_specs=[VMEM] * 9,
        out_specs=VMEM,
    )(vision.reshape(B * T, Dv), text.reshape(B * T, Dt),
      params["vis_w"], params["vis_b"].reshape(1, -1),
      params["txt_w"], params["txt_b"].reshape(1, -1),
      addend, params["emb_ln_g"].reshape(1, -1), params["emb_ln_b"].reshape(1, -1))

    # --- fused transformer stack: one pallas_call over (batch, layer) -------
    pad = ~mask.reshape(B, L)
    mask_bias = jnp.where(pad, jnp.float32(-1e9), jnp.float32(0.0)).reshape(B, 1, L)
    sp = params["stack"]
    NL = sp["wqkv"].shape[0]
    FF = sp["w1"].shape[-1]

    def xmap(b, l):          # activation / mask / output block: per batch
        return (b, 0, 0)

    def wmap(b, l):          # weight blocks: per layer (double-buffered)
        return (l, 0, 0)

    x = pl.pallas_call(
        functools.partial(stack_kernel, num_heads=H),
        out_shape=jax.ShapeDtypeStruct((B, L, E), jnp.float32),
        grid=(B, NL),
        in_specs=[
            pl.BlockSpec((1, L, E), xmap),          # x (only read at layer 0)
            pl.BlockSpec((1, 1, L), xmap),          # key-padding bias
            pl.BlockSpec((1, E, 3 * E), wmap),      # wqkv
            pl.BlockSpec((1, 1, 3 * E), wmap),      # bqkv
            pl.BlockSpec((1, E, E), wmap),          # wo
            pl.BlockSpec((1, 1, E), wmap),          # bo
            pl.BlockSpec((1, 1, E), wmap),          # ln1_g
            pl.BlockSpec((1, 1, E), wmap),          # ln1_b
            pl.BlockSpec((1, E, FF), wmap),         # w1
            pl.BlockSpec((1, 1, FF), wmap),         # b1
            pl.BlockSpec((1, FF, E), wmap),         # w2
            pl.BlockSpec((1, 1, E), wmap),          # b2
            pl.BlockSpec((1, 1, E), wmap),          # ln2_g
            pl.BlockSpec((1, 1, E), wmap),          # ln2_b
        ],
        out_specs=pl.BlockSpec((1, L, E), xmap),
        compiler_params=pltpu.CompilerParams(
            dimension_semantics=("parallel", "arbitrary")),
    )(x, mask_bias, sp["wqkv"], sp["bqkv"], sp["wo"], sp["bo"],
      sp["ln1_g"], sp["ln1_b"], sp["w1"], sp["b1"], sp["w2"], sp["b2"],
      sp["ln2_g"], sp["ln2_b"])

    # --- fused FusionOutputTransform ----------------------------------------
    maskf = mask.reshape(B, L, 1).astype(jnp.float32)
    hidden = pl.pallas_call(
        output_kernel,
        out_shape=jax.ShapeDtypeStruct((B, L, E), jnp.float32),
        in_specs=[VMEM] * 6,
        out_specs=VMEM,
    )(x, params["out_ln_g"].reshape(1, -1), params["out_ln_b"].reshape(1, -1),
      params["out_w"], params["out_b"].reshape(1, -1), maskf)

    hidden = hidden.reshape(B, 2, T, E)
    ret_mask = input_ids >= 3
    return hidden, ret_mask


# --------------------------------------------------------------------------
# parameter init (layer weights pre-stacked along a leading layer axis)
# --------------------------------------------------------------------------
def init_params(key, *, vision_dim, text_dim, embed_dim, num_layers, num_heads,
                ff_dim, vocab_size, max_positions, initializer_range=0.02):
    std = initializer_range
    keys = iter(jax.random.split(key, 16))

    def nrm(shape):
        return jax.random.normal(next(keys), shape, jnp.float32) * std

    E, FF, NL = embed_dim, ff_dim, num_layers
    z = lambda *s: jnp.zeros(s, jnp.float32)
    o = lambda *s: jnp.ones(s, jnp.float32)

    return dict(
        vis_w=nrm((vision_dim, E)), vis_b=z(E),
        txt_w=nrm((text_dim, E)), txt_b=z(E),
        tok_emb=nrm((vocab_size, E)),
        pos_emb=nrm((max_positions, E)),
        emb_ln_g=o(E), emb_ln_b=z(E),
        out_ln_g=o(E), out_ln_b=z(E),
        out_w=nrm((E, E)), out_b=z(E),
        num_heads=num_heads,
        stack=dict(
            wqkv=nrm((NL, E, 3 * E)), bqkv=z(NL, 1, 3 * E),
            wo=nrm((NL, E, E)), bo=z(NL, 1, E),
            ln1_g=o(NL, 1, E), ln1_b=z(NL, 1, E),
            w1=nrm((NL, E, FF)), b1=z(NL, 1, FF),
            w2=nrm((NL, FF, E)), b2=z(NL, 1, E),
            ln2_g=o(NL, 1, E), ln2_b=z(NL, 1, E),
        ),
    )


if __name__ == "__main__":
    B, T = 2, 8                 # batch, per-stream sequence length
    Dv, Dt = 16, 16             # raw vision / text feature dims
    E, n_layers, n_heads, FF = 32, 2, 4, 64
    vocab, maxpos = 8, 2 * T

    key = jax.random.PRNGKey(0)
    kp, k1, k2, k3 = jax.random.split(key, 4)

    params = init_params(
        kp, vision_dim=Dv, text_dim=Dt, embed_dim=E, num_layers=n_layers,
        num_heads=n_heads, ff_dim=FF, vocab_size=vocab, max_positions=maxpos,
    )

    vision = jax.random.normal(k1, (B, T, Dv), jnp.float32)
    text = jax.random.normal(k2, (B, T, Dt), jnp.float32)
    input_ids = jax.random.randint(k3, (B, 2), 0, vocab).astype(jnp.int32)
    vision_mask = jnp.ones((B, T), jnp.bool_).at[:, T - 2:].set(False)
    text_mask = jnp.ones((B, T), jnp.bool_)

    hidden, ret_mask = fusion_encoder_forward(
        params, input_ids, vision, vision_mask, text, text_mask
    )
    jax.block_until_ready(hidden)
    assert hidden.shape == (B, 2, T, E)
    assert ret_mask.shape == (B, 2) and ret_mask.dtype == jnp.bool_
    print("KERNEL_OK")
</pallas_src>

<mosaic_0001>
module attributes {stable_mosaic.version = 11 : i64} {
  func.func @embed_kernel(%arg0: memref<16x16xf32, #tpu.memory_space<vmem>>, %arg1: memref<16x16xf32, #tpu.memory_space<vmem>>, %arg2: memref<16x32xf32, #tpu.memory_space<vmem>>, %arg3: memref<1x32xf32, #tpu.memory_space<vmem>>, %arg4: memref<16x32xf32, #tpu.memory_space<vmem>>, %arg5: memref<1x32xf32, #tpu.memory_space<vmem>>, %arg6: memref<2x16x32xf32, #tpu.memory_space<vmem>>, %arg7: memref<1x32xf32, #tpu.memory_space<vmem>>, %arg8: memref<1x32xf32, #tpu.memory_space<vmem>>, %arg9: memref<2x16x32xf32, #tpu.memory_space<vmem>>) attributes {dimension_semantics = [], scalar_prefetch = 0 : i64, scratch_operands = 0 : i64, tpu.core_type = #tpu.core_type<tc>} {
    %c0 = arith.constant 0 : index
    %c0_0 = arith.constant 0 : index
    %0 = vector.load %arg0[%c0, %c0_0] : memref<16x16xf32, #tpu.memory_space<vmem>>, vector<16x16xf32>
    %c0_1 = arith.constant 0 : index
    %c0_2 = arith.constant 0 : index
    %1 = vector.load %arg2[%c0_1, %c0_2] : memref<16x32xf32, #tpu.memory_space<vmem>>, vector<16x32xf32>
    %cst = arith.constant dense<0.000000e+00> : vector<16x32xf32>
    %2 = tpu.matmul %0, %1, %cst {dimension_numbers = #tpu.dot_dimension_numbers<[1], [0], [0], [1], [0, 0, 1, 1], [], []>} : vector<16x16xf32>, vector<16x32xf32>, vector<16x32xf32> -> vector<16x32xf32>
    %c0_3 = arith.constant 0 : index
    %c0_4 = arith.constant 0 : index
    %3 = vector.load %arg3[%c0_3, %c0_4] : memref<1x32xf32, #tpu.memory_space<vmem>>, vector<1x32xf32>
    %4 = vector.broadcast %3 : vector<1x32xf32> to vector<16x32xf32>
    %5 = arith.addf %2, %4 : vector<16x32xf32>
    %6 = vector.shape_cast %5 : vector<16x32xf32> to vector<2x8x32xf32>
    %c0_5 = arith.constant 0 : index
    %c0_6 = arith.constant 0 : index
    %7 = vector.load %arg1[%c0_5, %c0_6] : memref<16x16xf32, #tpu.memory_space<vmem>>, vector<16x16xf32>
    %c0_7 = arith.constant 0 : index
    %c0_8 = arith.constant 0 : index
    %8 = vector.load %arg4[%c0_7, %c0_8] : memref<16x32xf32, #tpu.memory_space<vmem>>, vector<16x32xf32>
    %cst_9 = arith.constant dense<0.000000e+00> : vector<16x32xf32>
    %9 = tpu.matmul %7, %8, %cst_9 {dimension_numbers = #tpu.dot_dimension_numbers<[1], [0], [0], [1], [0, 0, 1, 1], [], []>} : vector<16x16xf32>, vector<16x32xf32>, vector<16x32xf32> -> vector<16x32xf32>
    %c0_10 = arith.constant 0 : index
    %c0_11 = arith.constant 0 : index
    %10 = vector.load %arg5[%c0_10, %c0_11] : memref<1x32xf32, #tpu.memory_space<vmem>>, vector<1x32xf32>
    %11 = vector.broadcast %10 : vector<1x32xf32> to vector<16x32xf32>
    %12 = arith.addf %9, %11 : vector<16x32xf32>
    %13 = vector.shape_cast %12 : vector<16x32xf32> to vector<2x8x32xf32>
    %c0_12 = arith.constant 0 : index
    %c0_13 = arith.constant 0 : index
    %c0_14 = arith.constant 0 : index
    %14 = vector.load %arg9[%c0_12, %c0_13, %c0_14] : memref<2x16x32xf32, #tpu.memory_space<vmem>>, vector<2x8x32xf32>
    tpu.vector_store %arg9[%c0_12, %c0_13, %c0_14], %6 {strides = array<i32>} : memref<2x16x32xf32, #tpu.memory_space<vmem>>, vector<2x8x32xf32>,
    %c0_15 = arith.constant 0 : index
    %c8 = arith.constant 8 : index
    %c0_16 = arith.constant 0 : index
    %15 = vector.load %arg9[%c0_15, %c8, %c0_16] : memref<2x16x32xf32, #tpu.memory_space<vmem>>, vector<2x8x32xf32>
    tpu.vector_store %arg9[%c0_15, %c8, %c0_16], %13 {strides = array<i32>} : memref<2x16x32xf32, #tpu.memory_space<vmem>>, vector<2x8x32xf32>,
    %c0_17 = arith.constant 0 : index
    %c0_18 = arith.constant 0 : index
    %c0_19 = arith.constant 0 : index
    %16 = vector.load %arg9[%c0_17, %c0_18, %c0_19] : memref<2x16x32xf32, #tpu.memory_space<vmem>>, vector<2x16x32xf32>
    %c0_20 = arith.constant 0 : index
    %c0_21 = arith.constant 0 : index
    %c0_22 = arith.constant 0 : index
    %17 = vector.load %arg6[%c0_20, %c0_21, %c0_22] : memref<2x16x32xf32, #tpu.memory_space<vmem>>, vector<2x16x32xf32>
    %18 = arith.addf %16, %17 : vector<2x16x32xf32>
    %c0_23 = arith.constant 0 : index
    %c0_24 = arith.constant 0 : index
    %19 = vector.load %arg7[%c0_23, %c0_24] : memref<1x32xf32, #tpu.memory_space<vmem>>, vector<1x32xf32>
    %c0_25 = arith.constant 0 : index
    %c0_26 = arith.constant 0 : index
    %20 = vector.load %arg8[%c0_25, %c0_26] : memref<1x32xf32, #tpu.memory_space<vmem>>, vector<1x32xf32>
    %cst_27 = arith.constant dense<0.000000e+00> : vector<2x16xf32>
    %21 = vector.multi_reduction <add>, %18, %cst_27 [2] : vector<2x16x32xf32> to vector<2x16xf32>
    %22 = vector.shape_cast %21 : vector<2x16xf32> to vector<2x16x1xf32>
    %cst_28 = arith.constant 3.200000e+01 : f32
    %23 = vector.broadcast %cst_28 : f32 to vector<2x16x1xf32>
    %24 = arith.divf %22, %23 : vector<2x16x1xf32>
    %25 = vector.broadcast %24 : vector<2x16x1xf32> to vector<2x16x32xf32>
    %26 = arith.subf %18, %25 : vector<2x16x32xf32>
    %27 = arith.mulf %26, %26 : vector<2x16x32xf32>
    %cst_29 = arith.constant dense<0.000000e+00> : vector<2x16xf32>
    %28 = vector.multi_reduction <add>, %27, %cst_29 [2] : vector<2x16x32xf32> to vector<2x16xf32>
    %29 = vector.shape_cast %28 : vector<2x16xf32> to vector<2x16x1xf32>
    %cst_30 = arith.constant 3.200000e+01 : f32
    %30 = vector.broadcast %cst_30 : f32 to vector<2x16x1xf32>
    %31 = arith.divf %29, %30 : vector<2x16x1xf32>
    %32 = vector.broadcast %24 : vector<2x16x1xf32> to vector<2x16x32xf32>
    %33 = arith.subf %18, %32 : vector<2x16x32xf32>
    %cst_31 = arith.constant 9.99999974E-6 : f32
    %34 = vector.broadcast %cst_31 : f32 to vector<2x16x1xf32>
    %35 = arith.addf %31, %34 : vector<2x16x1xf32>
    %36 = math.rsqrt %35 : vector<2x16x1xf32>
    %37 = vector.broadcast %36 : vector<2x16x1xf32> to vector<2x16x32xf32>
    %38 = arith.mulf %33, %37 : vector<2x16x32xf32>
    %39 = vector.shape_cast %19 : vector<1x32xf32> to vector<1x1x32xf32>
    %40 = vector.broadcast %39 : vector<1x1x32xf32> to vector<2x16x32xf32>
    %41 = arith.mulf %38, %40 : vector<2x16x32xf32>
    %42 = vector.shape_cast %20 : vector<1x32xf32> to vector<1x1x32xf32>
    %43 = vector.broadcast %42 : vector<1x1x32xf32> to vector<2x16x32xf32>
    %44 = arith.addf %41, %43 : vector<2x16x32xf32>
    %c0_32 = arith.constant 0 : index
    %c0_33 = arith.constant 0 : index
    %c0_34 = arith.constant 0 : index
    %45 = vector.load %arg9[%c0_32, %c0_33, %c0_34] : memref<2x16x32xf32, #tpu.memory_space<vmem>>, vector<2x16x32xf32>
    tpu.vector_store %arg9[%c0_32, %c0_33, %c0_34], %44 {strides = array<i32>} : memref<2x16x32xf32, #tpu.memory_space<vmem>>, vector<2x16x32xf32>,
    return
  }
}

</mosaic_0001>

<bundles_post_ra>
// kernel: tpu_custom_call.1
= control target key start
LH: loop header
LB: loop body
LE: loop exit
PB: predicated region body
PF: predicated region fallthrough
CT: control target
= control target key end

     0   :  { %14 = vsyncpa [#allocation3], 0  ;;  %s789_s0 = inlined_call_operand.hbm [shape: f32[16,16], index: 0, kind: input, shape index: {}]   ;;  %s790_s1 = inlined_call_operand.hbm [shape: f32[16,16], index: 1, kind: input, shape index: {}]   ;;  %s791_s2 = inlined_call_operand.hbm [shape: f32[16,32], index: 2, kind: input, shape index: {}]   ;;  %s792_s3 = inlined_call_operand.vmem [shape: f32[1,32], index: 3, kind: input, shape index: {}]   ;;  %s793_s4 = inlined_call_operand.hbm [shape: f32[16,32], index: 4, kind: input, shape index: {}]   ;;  %s794_s5 = inlined_call_operand.vmem [shape: f32[1,32], index: 5, kind: input, shape index: {}]   ;;  %s795_s6 = inlined_call_operand.hbm [shape: f32[2,16,32], index: 6, kind: input, shape index: {}]   ;;  %s796_s7 = inlined_call_operand.vmem [shape: f32[1,32], index: 7, kind: input, shape index: {}]   ;;  %s797_s8 = inlined_call_operand.vmem [shape: f32[1,32], index: 8, kind: input, shape index: {}]   ;;  %s798_s9 = inlined_call_operand.hbm [shape: f32[2,16,32], index: 9, kind: output, shape index: {}]  }
   0x1   :  { %15 = vsyncpa [#allocation6], 0 }
   0x2   :  { %16 = vsyncpa [#allocation9], 0 }
   0x3   :  { %17 = vsyncpa [#allocation4], 0  ;;  %s595_s30 = smov [#allocation5]   ;;  %s596_s11 = smov [#allocation8]  }
   0x4   :  { %s35_s10 = sshll.u32 %s595_s30, 4  ;;  %s61_s12 = sshll.u32 %s596_s11, 4  ;;  %s36_s10 = int_to_ptr.vmem [resolvable:$true] %s35_s10  ;;  %s653_s12 = int_to_ptr.vmem [resolvable:$true] %s61_s12 }
   0x5   :  { %s455_s15 = scalar_lea.hbm %s790_s1, 256 }
   0x6   :  { %p456_p0 = scmp.ne.s32.totalorder %s790_s1, %s455_s15  ;;  %p459_p1 = scmp.lt.u32.totalorder %s455_s15, %s790_s1 }
   0x8   :  { %p461_p2 = pnand %p459_p1, %p456_p0 }
   0xa   :  { %464 = shalt.err (!%p461_p2)
}
   0xb   :  { %s465_s20 = scalar_lea.vmem %s36_s10, 256  ;;  %p470_p4 = scmp.lt.s32.totalorder %s36_s10, %s36_s10 }
   0xc   :  { %p466_p3 = scmp.ne.s32.totalorder %s36_s10, %s465_s20  ;;  %p471_p5 = scmp.lt.s32.totalorder %s465_s20, %s465_s20 }
   0xe   :  { %p472_p6 = por %p471_p5, %p470_p4 }
  0x10   :  { %p473_p7 = pnand %p472_p6, %p466_p3 }
  0x12   :  { %476 = shalt.err (!%p473_p7)
}
  0x13   :  { %s597_s21 = smov 128   ;;  %s598_s22 = smov 8  }
  0x14   :  { %41 = dma.hbm_to_vmem [thread:$0]  %s790_s1, 256, %s36_s10, [#allocation6], %s597_s21, %s597_s21, %s598_s22  }
  0x15   :  { %s477_s27 = scalar_lea.hbm %s793_s4, 256 }
  0x16   :  { %p478_p8 = scmp.ne.s32.totalorder %s793_s4, %s477_s27  ;;  %p481_p9 = scmp.lt.u32.totalorder %s477_s27, %s793_s4 }
  0x18   :  { %p483_p10 = pnand %p481_p9, %p478_p8 }
  0x1a   :  { %486 = shalt.err (!%p483_p10)
}
  0x1b   :  { %s487_s13 = scalar_lea.vmem %s653_s12, 256  ;;  %p492_p12 = scmp.lt.s32.totalorder %s653_s12, %s653_s12 }
  0x1c   :  { %p488_p11 = scmp.ne.s32.totalorder %s653_s12, %s487_s13  ;;  %p493_p13 = scmp.lt.s32.totalorder %s487_s13, %s487_s13 }
  0x1e   :  { %p494_p0 = por %p493_p13, %p492_p12 }
  0x20   :  { %p495_p1 = pnand %p494_p0, %p488_p11 }
  0x22   :  { %498 = shalt.err (!%p495_p1)
}
  0x23   :  { %67 = dma.hbm_to_vmem [thread:$0]  %s793_s4, 256, %s653_s12, [#allocation9], %s597_s21, %s597_s21, %s598_s22  }
  0x24   :  { %s599_s14 = smov [#allocation2]   ;;  %s600_s16 = smov [#allocation7]  }
  0x25   :  { %s23_s15 = sshll.u32 %s599_s14, 4  ;;  %s47_s17 = sshll.u32 %s600_s16, 4  ;;  %s24_s15 = int_to_ptr.vmem [resolvable:$true] %s23_s15  ;;  %s690_s17 = int_to_ptr.vmem [resolvable:$true] %s47_s17 }
  0x26   :  { %s499_s20 = scalar_lea.hbm %s789_s0, 256 }
  0x27   :  { %p500_p2 = scmp.ne.s32.totalorder %s789_s0, %s499_s20  ;;  %p503_p3 = scmp.lt.u32.totalorder %s499_s20, %s789_s0 }
  0x29   :  { %p505_p4 = pnand %p503_p3, %p500_p2 }
  0x2b   :  { %508 = shalt.err (!%p505_p4)
}
  0x2c   :  { %s509_s4 = scalar_lea.vmem %s24_s15, 256  ;;  %p514_p6 = scmp.lt.s32.totalorder %s24_s15, %s24_s15 }
  0x2d   :  { %p510_p5 = scmp.ne.s32.totalorder %s24_s15, %s509_s4  ;;  %p515_p7 = scmp.lt.s32.totalorder %s509_s4, %s509_s4 }
  0x2f   :  { %p516_p8 = por %p515_p7, %p514_p6 }
  0x31   :  { %p517_p9 = pnand %p516_p8, %p510_p5 }
  0x33   :  { %520 = shalt.err (!%p517_p9)
}
  0x34   :  { %29 = dma.hbm_to_vmem [thread:$0]  %s789_s0, 256, %s24_s15, [#allocation3], %s597_s21, %s597_s21, %s598_s22  }
  0x35   :  { %s521_s30 = scalar_lea.hbm %s791_s2, 256 }
  0x36   :  { %p522_p10 = scmp.ne.s32.totalorder %s791_s2, %s521_s30  ;;  %p525_p11 = scmp.lt.u32.totalorder %s521_s30, %s791_s2 }
  0x38   :  { %p527_p12 = pnand %p525_p11, %p522_p10 }
  0x3a   :  { %530 = shalt.err (!%p527_p12)
}
  0x3b   :  { %s531_s14 = scalar_lea.vmem %s690_s17, 256  ;;  %p536_p0 = scmp.lt.s32.totalorder %s690_s17, %s690_s17 }
  0x3c   :  { %p532_p13 = scmp.ne.s32.totalorder %s690_s17, %s531_s14  ;;  %p537_p1 = scmp.lt.s32.totalorder %s531_s14, %s531_s14 }
  0x3e   :  { %p538_p2 = por %p537_p1, %p536_p0 }
  0x40   :  { %p539_p3 = pnand %p538_p2, %p532_p13 }
  0x42   :  { %542 = shalt.err (!%p539_p3)
}
  0x43   :  { %53 = dma.hbm_to_vmem [thread:$0]  %s791_s2, 256, %s690_s17, [#allocation6], %s597_s21, %s597_s21, %s598_s22  }
  0x44   :  { %s601_s16 = smov [#allocation10]   ;;  %s543_s23 = scalar_lea.hbm %s795_s6, 512 }
  0x45   :  { %s75_s18 = sshll.u32 %s601_s16, 4  ;;  %p544_p4 = scmp.ne.s32.totalorder %s795_s6, %s543_s23  ;;  %s76_s18 = int_to_ptr.vmem [resolvable:$true] %s75_s18 }
  0x46   :  { %p547_p5 = scmp.lt.u32.totalorder %s543_s23, %s795_s6 }
  0x48   :  { %p549_p6 = pnand %p547_p5, %p544_p4 }
  0x4a   :  { %552 = shalt.err (!%p549_p6)
}
  0x4b   :  { %s553_s12 = scalar_lea.vmem %s76_s18, 512  ;;  %p558_p8 = scmp.lt.s32.totalorder %s76_s18, %s76_s18 }
  0x4c   :  { %p554_p7 = scmp.ne.s32.totalorder %s76_s18, %s553_s12  ;;  %p559_p9 = scmp.lt.s32.totalorder %s553_s12, %s553_s12 }
  0x4e   :  { %p560_p10 = por %p559_p9, %p558_p8 }
  0x50   :  { %p561_p11 = pnand %p560_p10, %p554_p7 }
  0x52   :  { %564 = shalt.err (!%p561_p11)
}
  0x53   :  { %81 = dma.hbm_to_vmem [thread:$0]  %s795_s6, 512, %s76_s18, [#allocation9], %s597_s21, %s597_s21, %s598_s22  }
  0x54   :  { %587 = dma.done.wait [#allocation3], 256  }
  0x55   :  { %588 = vsyncadd [#allocation3], 4294967040 }
  0x56   :  { %589 = dma.done.wait [#allocation6], 512  }
  0x57   :  { %590 = vsyncadd [#allocation6], 4294966784 }
  0x58   :  { %591 = dma.done.wait [#allocation9], 768  }
  0x59   :  { %592 = vsyncadd [#allocation9], 4294966528  ;;  %vm112_vm0 = vcmask 130048   ;;  %v103_v0 = vld [vmem:[#allocation7] sm:$0xff]  ;;  %v104_v1 = vld [vmem:[#allocation7 + $0x8] sm:$0xff]  ;;  %vm286_vm1 = vcmask 261120  }
  0x5a   :  { %v101_v2 = vld [vmem:[#allocation2] sm:$0xff]  ;;  %v431_v3 = vpack.c.bf16 %v104_v1, %v103_v0  ;;  %v196_v4 = vld [vmem:[#allocation8] sm:$0xff]  ;;  %v197_v5 = vld [vmem:[#allocation8 + $0x8] sm:$0xff] }
  0x5b   :  { %421 = vmatprep.mubr.msk.f32.mxu0 %vm112_vm0, %v101_v2  ;;  %v435_v6 = vpack.c.bf16 %v197_v5, %v196_v4  ;;  %v194_v7 = vld [vmem:[#allocation5] sm:$0xff]  ;;  %v102_v8 = vld [vmem:[#allocation2 + $0x8] sm:$0xff]  ;;  %v195_v9 = vld [vmem:[#allocation5 + $0x8] sm:$0xff] }
  0x5c   :  { %432 = vmatprep.subr.bf16.mxu0 %v431_v3  ;;  %428 = vmatprep.mubr.msk.f32.mxu1 %vm112_vm0, %v194_v7  ;;  %v401_v10 = vld [vmem:[%s792_s3] ss:$0 sm:$0xff]  ;;  %v297_v20 = vld [vmem:[#allocation10 + $0x10] sm:$0xff]  ;;  %v298_v22 = vld [vmem:[#allocation10 + $0x18] sm:$0xff] }
  0x5d   :  { %434 = vmatpush3.bf16.msra.mxu0 %v431_v3  ;;  %436 = vmatprep.subr.bf16.mxu1 %v435_v6  ;;  %v404_v11 = vld [vmem:[%s794_s5] ss:$0 sm:$0xff]  ;;  %v296_v24 = vld [vmem:[#allocation10 + $0x8] sm:$0xff] }
  0x5e   :  { %438 = vmatpush3.bf16.msra.mxu1 %v435_v6  ;;  %v295_v21 = vld [vmem:[#allocation10] sm:$0xff] }
  0x5f   :  { %v407_v5 = vld [vmem:[%s796_s7] ss:$0 sm:$0xff]  ;;  %s602_s7 = smov [#allocation11]  }
  0x60   :  { %422 = vmatmul.mubr.msk.f32.vlgmr.msra.gmra.mrb[0].mxu0 %vm112_vm0, %v102_v8  ;;  %v408_v7 = vld [vmem:[%s797_s8] ss:$0 sm:$0xff]  ;;  %s387_s13 = sshll.u32 %s602_s7, 4  ;;  %s388_s13 = int_to_ptr.vmem [resolvable:$true] %s387_s13 }
  0x61   :  { %429 = vmatmul.mubr.msk.f32.vlgmr.msra.gmra.mrb[0].mxu1 %vm112_vm0, %v195_v9  ;;  %s565_s8 = scalar_lea.vmem %s388_s13, 512  ;;  %p570_p13 = scmp.lt.s32.totalorder %s388_s13, %s388_s13 }
  0x62   :  { %p566_p12 = scmp.ne.s32.totalorder %s388_s13, %s565_s8  ;;  %p571_p0 = scmp.lt.s32.totalorder %s565_s8, %s565_s8 }
  0x64   :  { %p572_p1 = por %p571_p0, %p570_p13 }
  0x66   :  { %p573_p2 = pnand %p572_p1, %p566_p12 }
 0x133   :  { %v423_v12 = vpop.f32.mrb[0].mxu0 }
 0x134   :  { %v191_v13 = vadd.f32 %v423_v12, %v401_v10  ;;  %v185_v14 = vpop.f32.mrb[1].mxu0  ;;  %v430_v15 = vpop.f32.mrb[0].mxu1 }
 0x135   :  { %v186_v16 = vadd.f32 %v401_v10, %v185_v14  ;;  %v283_v17 = vadd.f32 %v430_v15, %v404_v11  ;;  %v277_v18 = vpop.f32.mrb[1].mxu1 }
 0x136   :  { %288 = vst.msk [vmem:[#allocation11 + $0x10] sm:$0xff] %vm286_vm1, %v191_v13  ;;  %v278_v19 = vadd.f32 %v404_v11, %v277_v18 }
 0x137   :  { %287 = vst.msk [vmem:[#allocation11] sm:$0xff] %vm286_vm1, %v186_v16  ;;  %290 = vst.msk [vmem:[#allocation11 + $0x18] sm:$0xff] %vm286_vm1, %v283_v17 }
 0x138   :  { %289 = vst.msk [vmem:[#allocation11 + $0x8] sm:$0xff] %vm286_vm1, %v278_v19 }
 0x13d   :  { %v293_v23 = vld [vmem:[#allocation11 + $0x10] sm:$0xff] }
 0x13e   :  { %v301_v25 = vadd.f32 %v297_v20, %v293_v23  ;;  %v291_v26 = vld [vmem:[#allocation11] sm:$0xff]  ;;  %v294_v27 = vld [vmem:[#allocation11 + $0x18] sm:$0xff] }
 0x13f   :  { %v299_v28 = vadd.f32 %v295_v21, %v291_v26  ;;  %v302_v29 = vadd.f32 %v298_v22, %v294_v27  ;;  %v292_v30 = vld [vmem:[#allocation11 + $0x8] sm:$0xff] }
 0x140   :  { %v311_v31 = vsel %vm286_vm1, %v301_v25, 0.0  ;;  %v300_v32 = vadd.f32 %v296_v24, %v292_v30 }
 0x141   :  { %312 = vadd.xlane.f32.xlu1 %v311_v31  ;;  %v305_v33 = vsel %vm286_vm1, %v299_v28, 0.0  ;;  %v314_v34 = vsel %vm286_vm1, %v302_v29, 0.0 }
 0x142   :  { %306 = vadd.xlane.f32.xlu0 %v305_v33  ;;  %v308_v35 = vsel %vm286_vm1, %v300_v32, 0.0 }
 0x145   :  { %315 = vadd.xlane.f32.xlu1 %v314_v34 }
 0x146   :  { %309 = vadd.xlane.f32.xlu0 %v308_v35 }
 0x1ce   :  { %v313_v36 = vpop.xlane.xlu1 %312 }
 0x1cf   :  { %v320_v37 = vmul.f32 0.03125, %v313_v36  ;;  %v307_v38 = vpop.xlane.xlu0 %306 }
 0x1d0   :  { %v318_v39 = vmul.f32 0.03125, %v307_v38 }
 0x1d1   :  { %v324_v40 = vsub.f32 %v301_v25, %v320_v37 }
 0x1d2   :  { %v322_v41 = vsub.f32 %v299_v28, %v318_v39  ;;  %v316_v42 = vpop.xlane.xlu1 %315 }
 0x1d3   :  { %v321_v43 = vmul.f32 0.03125, %v316_v42  ;;  %v310_v44 = vpop.xlane.xlu0 %309  ;;  %v328_v50 = vmul.f32 %v324_v40, %v324_v40 }
 0x1d4   :  { %v319_v45 = vmul.f32 0.03125, %v310_v44  ;;  %v326_v46 = vmul.f32 %v322_v41, %v322_v41 }
 0x1d5   :  { %v325_v47 = vsub.f32 %v302_v29, %v321_v43  ;;  %v336_v52 = vsel %vm286_vm1, %v328_v50, 0.0 }
 0x1d6   :  { %v323_v48 = vsub.f32 %v300_v32, %v319_v45  ;;  %v330_v49 = vsel %vm286_vm1, %v326_v46, 0.0 }
 0x1d7   :  { %331 = vadd.xlane.f32.xlu0 %v330_v49  ;;  %v329_v54 = vmul.f32 %v325_v47, %v325_v47 }
 0x1d8   :  { %v327_v51 = vmul.f32 %v323_v48, %v323_v48 }
 0x1d9   :  { %v339_v55 = vsel %vm286_vm1, %v329_v54, 0.0 }
 0x1da   :  { %v333_v53 = vsel %vm286_vm1, %v327_v51, 0.0 }
 0x1db   :  { %337 = vadd.xlane.f32.xlu0 %v336_v52  ;;  %334 = vadd.xlane.f32.xlu1 %v333_v53 }
 0x1df   :  { %340 = vadd.xlane.f32.xlu1 %v339_v55 }
 0x264   :  { %v332_v56 = vpop.xlane.xlu0 %331 }
 0x265   :  { %v342_v57 = vmul.f32 0.03125, %v332_v56 }
 0x267   :  { %v346_v58 = vadd.f32 1e-05, %v342_v57 }
 0x268   :  { %v335_v59 = vpop.xlane.xlu1 %334  ;;  %v338_v60 = vpop.xlane.xlu0 %337 }
 0x269   :  { %447 = vrsqrt.f32 %v346_v58  ;;  %v343_v61 = vmul.f32 0.03125, %v335_v59  ;;  %v344_v62 = vmul.f32 0.03125, %v338_v60 }
 0x26b   :  { %v347_v63 = vadd.f32 1e-05, %v343_v61  ;;  %v348_v0 = vadd.f32 1e-05, %v344_v62 }
 0x26c   :  { %v341_v1 = vpop.xlane.xlu1 %340 }
 0x26d   :  { %449 = vrsqrt.f32 %v347_v63  ;;  %v345_v2 = vmul.f32 0.03125, %v341_v1 }
 0x26e   :  { %451 = vrsqrt.f32 %v348_v0 }
 0x26f   :  { %v349_v3 = vadd.f32 1e-05, %v345_v2 }
 0x271   :  { %453 = vrsqrt.f32 %v349_v3 }
 0x273   :  { %v448_v4 = vpop.eup %447 }
 0x274   :  { %v354_v6 = vmul.f32 %v448_v4, %v322_v41 }
 0x276   :  { %v364_v8 = vmul.f32 %v407_v5, %v354_v6 }
 0x277   :  { %v450_v9 = vpop.eup %449 }
 0x278   :  { %v452_v10 = vpop.eup %451  ;;  %v374_v11 = vadd.f32 %v408_v7, %v364_v8  ;;  %v355_v12 = vmul.f32 %v450_v9, %v323_v48 }
 0x279   :  { %v356_v13 = vmul.f32 %v452_v10, %v324_v40 }
 0x27a   :  { %378 = vst.msk [vmem:[#allocation11] sm:$0xff] %vm286_vm1, %v374_v11  ;;  %v365_v14 = vmul.f32 %v407_v5, %v355_v12 }
 0x27b   :  { %v454_v15 = vpop.eup %453  ;;  %v366_v16 = vmul.f32 %v407_v5, %v356_v13 }
 0x27c   :  { %v375_v17 = vadd.f32 %v408_v7, %v365_v14  ;;  %v357_v18 = vmul.f32 %v454_v15, %v325_v47 }
 0x27d   :  { %v376_v19 = vadd.f32 %v408_v7, %v366_v16 }
 0x27e   :  { %379 = vst.msk [vmem:[#allocation11 + $0x8] sm:$0xff] %vm286_vm1, %v375_v17  ;;  %v367_v20 = vmul.f32 %v407_v5, %v357_v18 }
 0x27f   :  { %380 = vst.msk [vmem:[#allocation11 + $0x10] sm:$0xff] %vm286_vm1, %v376_v19 }
 0x280   :  { %v377_v21 = vadd.f32 %v408_v7, %v367_v20 }
 0x282   :  { %381 = vst.msk [vmem:[#allocation11 + $0x18] sm:$0xff] %vm286_vm1, %v377_v21 }
 0x283   :  { %576 = shalt.err (!%p573_p2)
}
 0x284   :  { %s577_s14 = scalar_lea.hbm %s798_s9, 512 }
 0x285   :  { %p578_p3 = scmp.ne.s32.totalorder %s798_s9, %s577_s14  ;;  %p581_p4 = scmp.lt.u32.totalorder %s577_s14, %s798_s9 }
 0x287   :  { %p583_p5 = pnand %p581_p4, %p578_p3 }
 0x289   :  { %586 = shalt.err (!%p583_p5)
}
 0x28a   :  { %393 = dma.vmem_to_hbm [thread:$0]  %s388_s13, 512, %s798_s9, [#allocation4], %s597_s21, %s597_s21, %s598_s22  }
 0x28b   :  { %593 = dma.done.wait [#allocation4], 512  }
 0x28c   :  { %594 = vsyncadd [#allocation4], 4294966784 }
 0x28d   :  { %397 = vsyncpa [#allocation3], 1 }
 0x28e   :  { %398 = vsyncpa [#allocation6], 1 }
 0x28f   :  { %399 = vsyncpa [#allocation9], 1 }
 0x290   :  { %400 = vsyncpa [#allocation4], 1 }

</bundles_post_ra>
